<compile_context>
chip_gen: v6e
topology: v6e:2x2x1
jax: 0.10.0
libtpu: 0.0.40
codegen_flags: <defaults>
</compile_context>

<pallas_src>
import math
import functools

import jax
import jax.numpy as jnp
from jax.experimental import pallas as pl
from jax.experimental.pallas import tpu as pltpu


def _round_up(v, m):
    return ((v + m - 1) // m) * m


# --------------------------------------------------------------------------- #
# Fused linear kernel:  act(x @ W + b) [+ residual, relu], K on grid axis 2.
# --------------------------------------------------------------------------- #
def _fused_linear_kernel(flags_ref, x_ref, w_ref, b_ref, *refs,
                         activation, has_residual):
    if has_residual:
        res_ref, o_ref, acc_ref = refs
    else:
        res_ref = None
        o_ref, acc_ref = refs

    i = pl.program_id(0)
    k = pl.program_id(2)
    nk = pl.num_programs(2)

    # Fold the bias into the accumulator init (saves a full-tile epilogue add).
    @pl.when(k == 0)
    def _():
        acc_ref[...] = jnp.broadcast_to(
            b_ref[...].astype(jnp.float32), acc_ref.shape)

    # Skip MXU work for all-zero (tm, tk) input blocks (sparse fingerprints).
    @pl.when(flags_ref[i * nk + k] != 0)
    def _():
        acc_ref[...] += jnp.dot(
            x_ref[...], w_ref[...], preferred_element_type=jnp.float32)

    @pl.when(k == nk - 1)
    def _():
        out = acc_ref[...]
        if activation == "relu":
            out = jnp.maximum(out, 0.0)
        elif activation == "tanh":
            out = jnp.tanh(out)
        if has_residual:
            # relu(residual + block(x)) fused into the store epilogue.
            out = jnp.maximum(out + res_ref[...].astype(jnp.float32), 0.0)
        o_ref[...] = out.astype(o_ref.dtype)


@functools.partial(
    jax.jit,
    static_argnames=("activation", "tm", "tn", "tk",
                     "skip_zero_blocks", "compute_dtype"))
def fused_linear(x, w, b=None, residual=None, *, activation=None,
                 tm=256, tn=256, tk=512, skip_zero_blocks=False,
                 compute_dtype=None):
    """act(x @ w + b) [optionally relu(.+residual)] as one Pallas TPU kernel."""
    M, K = x.shape
    K2, N = w.shape
    assert K == K2, (K, K2)
    out_dtype = x.dtype

    if b is None:
        b = jnp.zeros((N,), dtype=jnp.float32)
    if residual is not None:
        assert residual.shape == (M, N), (residual.shape, (M, N))

    if compute_dtype is not None:
        x = x.astype(compute_dtype)
        w = w.astype(compute_dtype)

    itemsize = x.dtype.itemsize
    sublane = 8 * (4 // itemsize)          # 8 for f32, 16 for bf16

    # Clamp the requested tiles to the (padded) problem, keep them layout-legal.
    tm_e = min(tm, _round_up(M, sublane))
    tn_e = min(tn, _round_up(N, 128))
    tk_e = min(tk, _round_up(K, 128))

    Mp, Np, Kp = _round_up(M, tm_e), _round_up(N, tn_e), _round_up(K, tk_e)
    if (Mp, Kp) != (M, K):
        x = jnp.pad(x, ((0, Mp - M), (0, Kp - K)))
    if (Kp, Np) != (K, N):
        w = jnp.pad(w, ((0, Kp - K), (0, Np - N)))
    bias2d = jnp.pad(b.astype(jnp.float32), (0, Np - N)).reshape(1, Np)

    mg, ng, kg = Mp // tm_e, Np // tn_e, Kp // tk_e

    # Per-(i, k) non-zero block flags, scalar-prefetched into SMEM.
    if skip_zero_blocks:
        flags = (x.reshape(mg, tm_e, kg, tk_e) != 0).any(axis=(1, 3))
        flags = flags.astype(jnp.int32).reshape(mg * kg)
    else:
        flags = jnp.ones((mg * kg,), dtype=jnp.int32)

    has_residual = residual is not None
    res_bytes = Mp * Np * out_dtype.itemsize if has_residual else 0

    # HBM traffic / FLOP hint so XLA can schedule the rest of the backbone
    # around this custom call.
    cost = pl.CostEstimate(
        flops=2 * Mp * Np * Kp,
        transcendentals=(Mp * Np) if activation == "tanh" else 0,
        bytes_accessed=int(Mp * Kp * itemsize * ng
                           + Kp * Np * itemsize * mg
                           + Mp * Np * out_dtype.itemsize + 4 * Np
                           + res_bytes))

    # Explicit VMEM budget: double-buffered inputs/outputs + f32 accumulator.
    # Capped at 64 MiB so the limit is valid on v7x (64 MiB physical) as well
    # as v5e/v6e.
    x_tile_b = tm_e * tk_e * itemsize
    w_tile_b = tk_e * tn_e * itemsize
    o_tile_b = tm_e * tn_e * out_dtype.itemsize
    r_tile_b = tm_e * tn_e * out_dtype.itemsize if has_residual else 0
    acc_b = tm_e * tn_e * 4
    b_tile_b = tn_e * 4
    vmem_needed = 2 * (x_tile_b + w_tile_b + o_tile_b + b_tile_b + r_tile_b) + acc_b
    vmem_limit = int(min(max(2 * vmem_needed, 32 * 1024 * 1024),
                         64 * 1024 * 1024))

    in_specs = [
        pl.BlockSpec((tm_e, tk_e), lambda i, j, k, fl: (i, k)),   # x
        pl.BlockSpec((tk_e, tn_e), lambda i, j, k, fl: (k, j)),   # W
        pl.BlockSpec((1, tn_e), lambda i, j, k, fl: (0, j)),      # bias
    ]
    inputs = [flags, x, w, bias2d]
    if has_residual:
        res_p = residual
        if (Mp, Np) != (M, N):
            res_p = jnp.pad(residual, ((0, Mp - M), (0, Np - N)))
        # Same block index for every k -> DMA'd once per (i, j), read only in
        # the epilogue.
        in_specs.append(pl.BlockSpec((tm_e, tn_e), lambda i, j, k, fl: (i, j)))
        inputs.append(res_p)

    out = pl.pallas_call(
        functools.partial(_fused_linear_kernel, activation=activation,
                          has_residual=has_residual),
        out_shape=jax.ShapeDtypeStruct((Mp, Np), out_dtype),
        grid_spec=pltpu.PrefetchScalarGridSpec(
            num_scalar_prefetch=1,
            grid=(mg, ng, kg),
            in_specs=in_specs,
            out_specs=pl.BlockSpec((tm_e, tn_e), lambda i, j, k, fl: (i, j)),
            scratch_shapes=[pltpu.VMEM((tm_e, tn_e), jnp.float32)],
        ),
        compiler_params=pltpu.CompilerParams(
            dimension_semantics=("parallel", "parallel", "arbitrary"),
            vmem_limit_bytes=vmem_limit,
        ),
        cost_estimate=cost,
    )(*inputs)

    if (Mp, Np) != (M, N):
        out = out[:M, :N]
    return out


# --------------------------------------------------------------------------- #
# SparseChem backbone (inference) built on the fused kernel.
# --------------------------------------------------------------------------- #
def init_backbone_params(key, input_size, hidden_sizes, tail_hidden_size):
    """xavier_uniform(gain=sqrt(2), 'relu') weights, bias filled with 0.1
    (matches SparseChem_Backbone.init_weights for SparseLinear layers)."""
    sizes = [input_size] + list(hidden_sizes) + [tail_hidden_size]
    keys = jax.random.split(key, len(sizes) - 1)
    gain = math.sqrt(2.0)
    layers = []
    for k, (fi, fo) in zip(keys, zip(sizes[:-1], sizes[1:])):
        bound = gain * math.sqrt(6.0 / (fi + fo))
        w = jax.random.uniform(k, (fi, fo), minval=-bound, maxval=bound,
                               dtype=jnp.float32)
        layers.append({"w": w, "b": jnp.full((fo,), 0.1, dtype=jnp.float32)})
    return {"input": layers[0], "blocks": layers[1:]}


def sparsechem_backbone_forward(x, params, *, policy=None, skip_residual=True,
                                skip_hidden=False, first_non_linearity="relu",
                                middle_non_linearity="relu",
                                last_non_linearity="relu",
                                tm=256, tn=256, tk=512):
    # Input layer: SparseLinear + non-linearity.  Dropout = identity at inference.
    # TODO(synk): nn.Dropout omitted (inference mode only).
    h = fused_linear(x, params["input"]["w"], params["input"]["b"],
                     activation=first_non_linearity, skip_zero_blocks=True,
                     tm=tm, tn=tn, tk=tk)
    if skip_hidden and policy is None:
        return h
    # TODO(synk): SparseChemBlock class body is not in the spec; blocks are
    # implemented as Linear -> non-linearity (-> dropout=identity), the standard
    # SparseChem block structure.
    n_blocks = len(params["blocks"])
    for idx, blk in enumerate(params["blocks"]):
        act = last_non_linearity if idx == n_blocks - 1 else middle_non_linearity
        if policy is not None:
            # fx = relu(residual + block(x))  fused into the matmul epilogue;
            # residual layers are None so residual = h.
            fx = fused_linear(h, blk["w"], blk["b"], residual=h,
                              activation=act, tm=tm, tn=tn, tk=tk)
            h = fx * policy[idx, 0] + h * policy[idx, 1]
        elif skip_residual:
            h = fused_linear(h, blk["w"], blk["b"], activation=act,
                             tm=tm, tn=tn, tk=tk)
        else:
            # x = relu(residual + block(x)) fully fused (no extra HBM pass).
            h = fused_linear(h, blk["w"], blk["b"], residual=h,
                             activation=act, tm=tm, tn=tn, tk=tk)
    return h


def backbone_reference(x, params, *, skip_residual=True):
    """Pure-JAX reference for correctness checking."""
    h = jax.nn.relu(x @ params["input"]["w"] + params["input"]["b"])
    for blk in params["blocks"]:
        y = jax.nn.relu(h @ blk["w"] + blk["b"])
        h = y if skip_residual else jax.nn.relu(h + y)
    return h


if __name__ == "__main__":
    key = jax.random.PRNGKey(0)
    k_x, k_mask, k_p, k_p2 = jax.random.split(key, 4)

    # Small shapes consistent with the module (sparse fingerprint input,
    # two hidden sizes + one tail hidden size).
    batch = 32
    input_size = 384
    hidden_sizes = [128, 96]
    tail_hidden = 64

    # Sparse, fingerprint-like input (~5% density).
    dense = jax.random.normal(k_x, (batch, input_size), dtype=jnp.float32)
    mask = jax.random.bernoulli(k_mask, 0.05, (batch, input_size))
    x = jnp.where(mask, jnp.abs(dense), 0.0).astype(jnp.float32)

    params = init_backbone_params(k_p, input_size, hidden_sizes, tail_hidden)

    # skip_residual=True path.
    out = sparsechem_backbone_forward(x, params, skip_residual=True)
    jax.block_until_ready(out)
    ref = backbone_reference(x, params, skip_residual=True)
    assert out.shape == (batch, tail_hidden)
    assert jnp.allclose(out, ref, atol=1e-3, rtol=1e-3)

    # skip_residual=False path (fused residual + ReLU epilogue); equal widths
    # so the residual add is shape-valid, matching the PyTorch requirement.
    params_res = init_backbone_params(k_p2, input_size, [128, 128], 128)
    out_res = sparsechem_backbone_forward(x, params_res, skip_residual=False)
    jax.block_until_ready(out_res)
    ref_res = backbone_reference(x, params_res, skip_residual=False)
    assert out_res.shape == (batch, 128)
    assert jnp.allclose(out_res, ref_res, atol=1e-3, rtol=1e-3)

    # Exercise the bf16-weights fast path of the input (SparseLinear) layer.
    out_bf16 = fused_linear(x, params["input"]["w"], params["input"]["b"],
                            activation="relu", compute_dtype=jnp.bfloat16,
                            skip_zero_blocks=True)
    jax.block_until_ready(out_bf16)
    assert bool(jnp.isfinite(out_bf16).all())

    print("KERNEL_OK")
</pallas_src>

<mosaic_0001>
module attributes {stable_mosaic.version = 11 : i64} {
  func.func @_fused_linear_kernel(%arg0: i32, %arg1: i32, %arg2: i32, %arg3: memref<1xi32, #tpu.memory_space<smem>>, %arg4: memref<32x384xf32, #tpu.memory_space<vmem>>, %arg5: memref<384x128xf32, #tpu.memory_space<vmem>>, %arg6: memref<1x128xf32, #tpu.memory_space<vmem>>, %arg7: memref<32x128xf32, #tpu.memory_space<vmem>>, %arg8: memref<32x128xf32, #tpu.memory_space<vmem>>) attributes {dimension_semantics = [#tpu.dimension_semantics<parallel>, #tpu.dimension_semantics<parallel>, #tpu.dimension_semantics<arbitrary>], iteration_bounds = array<i64: 1, 1, 1>, scalar_prefetch = 1 : i64, scratch_operands = 1 : i64, tpu.core_type = #tpu.core_type<tc>, window_params = [{transform_indices = @transform_0, window_bounds = array<i64: 32, 384>}, {transform_indices = @transform_1, window_bounds = array<i64: 384, 128>}, {transform_indices = @transform_2, window_bounds = array<i64: 1, 128>}, {transform_indices = @transform_3, window_bounds = array<i64: 32, 128>}]} {
    %c0_i32 = arith.constant 0 : i32
    %0 = arith.cmpi eq, %arg2, %c0_i32 : i32
    %1 = arith.extui %0 : i1 to i32
    %c0_i32_0 = arith.constant 0 : i32
    %2 = arith.cmpi ne, %1, %c0_i32_0 : i32
    scf.if %2 {
      %c0 = arith.constant 0 : index
      %c0_5 = arith.constant 0 : index
      %13 = vector.load %arg6[%c0, %c0_5] : memref<1x128xf32, #tpu.memory_space<vmem>>, vector<1x128xf32>
      %14 = vector.shape_cast %13 : vector<1x128xf32> to vector<1x128xf32>
      %15 = vector.broadcast %14 : vector<1x128xf32> to vector<32x128xf32>
      %c0_6 = arith.constant 0 : index
      %c0_7 = arith.constant 0 : index
      %16 = vector.load %arg8[%c0_6, %c0_7] : memref<32x128xf32, #tpu.memory_space<vmem>>, vector<32x128xf32>
      tpu.vector_store %arg8[%c0_6, %c0_7], %15 {strides = array<i32>} : memref<32x128xf32, #tpu.memory_space<vmem>>, vector<32x128xf32>,
    } else {
    }
    %c1_i32 = arith.constant 1 : i32
    %3 = arith.muli %arg0, %c1_i32 : i32
    %4 = arith.addi %3, %arg2 : i32
    %5 = arith.index_cast %4 : i32 to index
    %6 = memref.load %arg3[%5] : memref<1xi32, #tpu.memory_space<smem>>
    %c0_i32_1 = arith.constant 0 : i32
    %7 = arith.cmpi ne, %6, %c0_i32_1 : i32
    %8 = arith.extui %7 : i1 to i32
    %c0_i32_2 = arith.constant 0 : i32
    %9 = arith.cmpi ne, %8, %c0_i32_2 : i32
    scf.if %9 {
      %c0 = arith.constant 0 : index
      %c0_5 = arith.constant 0 : index
      %13 = vector.load %arg8[%c0, %c0_5] : memref<32x128xf32, #tpu.memory_space<vmem>>, vector<32x128xf32>
      %c0_6 = arith.constant 0 : index
      %c0_7 = arith.constant 0 : index
      %14 = vector.load %arg4[%c0_6, %c0_7] : memref<32x384xf32, #tpu.memory_space<vmem>>, vector<32x384xf32>
      %c0_8 = arith.constant 0 : index
      %c0_9 = arith.constant 0 : index
      %15 = vector.load %arg5[%c0_8, %c0_9] : memref<384x128xf32, #tpu.memory_space<vmem>>, vector<384x128xf32>
      %cst = arith.constant dense<0.000000e+00> : vector<32x128xf32>
      %16 = tpu.matmul %14, %15, %cst {dimension_numbers = #tpu.dot_dimension_numbers<[1], [0], [0], [1], [0, 0, 1, 1], [], []>} : vector<32x384xf32>, vector<384x128xf32>, vector<32x128xf32> -> vector<32x128xf32>
      %17 = arith.addf %13, %16 : vector<32x128xf32>
      %c0_10 = arith.constant 0 : index
      %c0_11 = arith.constant 0 : index
      %18 = vector.load %arg8[%c0_10, %c0_11] : memref<32x128xf32, #tpu.memory_space<vmem>>, vector<32x128xf32>
      tpu.vector_store %arg8[%c0_10, %c0_11], %17 {strides = array<i32>} : memref<32x128xf32, #tpu.memory_space<vmem>>, vector<32x128xf32>,
    } else {
    }
    %c0_i32_3 = arith.constant 0 : i32
    %10 = arith.cmpi eq, %arg2, %c0_i32_3 : i32
    %11 = arith.extui %10 : i1 to i32
    %c0_i32_4 = arith.constant 0 : i32
    %12 = arith.cmpi ne, %11, %c0_i32_4 : i32
    scf.if %12 {
      %c0 = arith.constant 0 : index
      %c0_5 = arith.constant 0 : index
      %13 = vector.load %arg8[%c0, %c0_5] : memref<32x128xf32, #tpu.memory_space<vmem>>, vector<32x128xf32>
      %cst = arith.constant 0.000000e+00 : f32
      %14 = vector.broadcast %cst : f32 to vector<32x128xf32>
      %15 = arith.maximumf %13, %14 : vector<32x128xf32>
      %c0_6 = arith.constant 0 : index
      %c0_7 = arith.constant 0 : index
      %16 = vector.load %arg7[%c0_6, %c0_7] : memref<32x128xf32, #tpu.memory_space<vmem>>, vector<32x128xf32>
      tpu.vector_store %arg7[%c0_6, %c0_7], %15 {strides = array<i32>} : memref<32x128xf32, #tpu.memory_space<vmem>>, vector<32x128xf32>,
    } else {
    }
    return
  }
  func.func @transform_0(%arg0: i32, %arg1: i32, %arg2: i32, %arg3: memref<1xi32, #tpu.memory_space<smem>>) -> (i32, i32) {
    %c0_i32 = arith.constant 0 : i32
    return %arg0, %arg2 : i32, i32
  }
  func.func @transform_1(%arg0: i32, %arg1: i32, %arg2: i32, %arg3: memref<1xi32, #tpu.memory_space<smem>>) -> (i32, i32) {
    %c0_i32 = arith.constant 0 : i32
    return %arg2, %arg1 : i32, i32
  }
  func.func @transform_2(%arg0: i32, %arg1: i32, %arg2: i32, %arg3: memref<1xi32, #tpu.memory_space<smem>>) -> (i32, i32) {
    %c0_i32 = arith.constant 0 : i32
    %c0_i32_0 = arith.constant 0 : i32
    return %c0_i32, %arg1 : i32, i32
  }
  func.func @transform_3(%arg0: i32, %arg1: i32, %arg2: i32, %arg3: memref<1xi32, #tpu.memory_space<smem>>) -> (i32, i32) {
    %c0_i32 = arith.constant 0 : i32
    return %arg0, %arg1 : i32, i32
  }
}

</mosaic_0001>

<bundles_post_ra>
// kernel: fused_linear.1
= control target key start
LH: loop header
LB: loop body
LE: loop exit
PB: predicated region body
PF: predicated region fallthrough
CT: control target
= control target key end

     0   :  { %10 = vsyncpa [#allocation6], 0  ;;  %s561_s0 = inlined_call_operand.<no memory space> [shape: s32[1], index: 0, kind: input, shape index: {}]   ;;  %s562_s1 = inlined_call_operand.vmem [shape: f32[32,384], index: 1, kind: input, shape index: {}]   ;;  %s563_s2 = inlined_call_operand.hbm [shape: f32[384,128], index: 2, kind: input, shape index: {}]   ;;  %s564_s3 = inlined_call_operand.vmem [shape: f32[1,128], index: 3, kind: input, shape index: {}]   ;;  %s565_s4 = inlined_call_operand.hbm [shape: f32[32,128], index: 4, kind: output, shape index: {}]  }
   0x1   :  { %11 = vsyncpa [#allocation7], 0  ;;  %s478_s15 = smov [#allocation5]  }
   0x2   :  { %s19_s16 = sshll.u32 %s478_s15, 4  ;;  %s20_s16 = int_to_ptr.vmem [resolvable:$true] %s19_s16 }
   0x3   :  { %s442_s17 = scalar_lea.vmem %s20_s16, 6144  ;;  %p447_p1 = scmp.lt.s32.totalorder %s20_s16, %s20_s16 }
   0x4   :  { %p443_p0 = scmp.ne.s32.totalorder %s20_s16, %s442_s17  ;;  %p448_p2 = scmp.lt.s32.totalorder %s442_s17, %s442_s17 }
   0x6   :  { %p449_p3 = por %p448_p2, %p447_p1 }
   0x8   :  { %p450_p4 = pnand %p449_p3, %p443_p0 }
   0xa   :  { %453 = shalt.err (!%p450_p4)
}
   0xb   :  { %s479_s18 = smov 128   ;;  %s480_s19 = smov 8  }
   0xc   :  { %25 = dma.hbm_to_vmem [thread:$0]  %s563_s2, 6144, %s20_s16, [#allocation6], %s479_s18, %s479_s18, %s480_s19  }
   0xd   :  { %474 = dma.done.wait [#allocation6], 6144  }
   0xe   :  { %475 = vsyncadd [#allocation6], 4294961152  ;;  %v326_v0 = vld [vmem:[%s564_s3] ss:$0 sm:$0xff]  ;;  %p327_p5 = scmp.eq.s32.totalorder %s561_s0, 0 }
   0xf   :  { %42 = vst [vmem:[#allocation2 + $0x10] sm:$0xff] %v326_v0  ;;  %43 = vst [vmem:[#allocation2] sm:$0xff] %v326_v0 }
  0x10   :  { %44 = vst [vmem:[#allocation2 + $0x18] sm:$0xff] %v326_v0  ;;  %45 = vst [vmem:[#allocation2 + $0x8] sm:$0xff] %v326_v0  ;;  %51 = sbr.rel (%p327_p5) target bundleno = 268 (0x10c), region = 25 }
  0x15   :  { %v99_v1 = vld [vmem:[#allocation5 + $0xf8] sm:$0xff]  ;;  %v98_v3 = vld [vmem:[#allocation5 + $0xf0] sm:$0xff]  ;;  %v97_v6 = vld [vmem:[#allocation5 + $0xe8] sm:$0xff] }
  0x16   :  { %v83_v2 = vld [vmem:[#allocation5 + $0x78] sm:$0xff]  ;;  %328 = vmatprep.subr.mxu0 %v99_v1  ;;  %v82_v5 = vld [vmem:[#allocation5 + $0x70] sm:$0xff]  ;;  %v81_v8 = vld [vmem:[#allocation5 + $0x68] sm:$0xff] }
  0x17   :  { %v115_v4 = vld [vmem:[#allocation5 + $0x178] sm:$0xff]  ;;  %329 = vmatpush3.msra.mxu0 %v83_v2  ;;  %v114_v7 = vld [vmem:[#allocation5 + $0x170] sm:$0xff]  ;;  %v113_v9 = vld [vmem:[#allocation5 + $0x168] sm:$0xff] }
  0x18   :  { %392 = vmatprep.subr.mxu1 %v115_v4  ;;  %330 = vmatprep.subr.mxu0 %v98_v3  ;;  %v96_v10 = vld [vmem:[#allocation5 + $0xe0] sm:$0xff]  ;;  %v95_v13 = vld [vmem:[#allocation5 + $0xd8] sm:$0xff]  ;;  %v94_v16 = vld [vmem:[#allocation5 + $0xd0] sm:$0xff] }
  0x19   :  { %393 = vmatpush3.msra.mxu1 %v115_v4  ;;  %331 = vmatpush3.msra.mxu0 %v82_v5  ;;  %v80_v11 = vld [vmem:[#allocation5 + $0x60] sm:$0xff]  ;;  %v79_v14 = vld [vmem:[#allocation5 + $0x58] sm:$0xff]  ;;  %v78_v17 = vld [vmem:[#allocation5 + $0x50] sm:$0xff] }
  0x1a   :  { %394 = vmatprep.subr.mxu1 %v114_v7  ;;  %332 = vmatprep.subr.mxu0 %v97_v6  ;;  %v112_v12 = vld [vmem:[#allocation5 + $0x160] sm:$0xff]  ;;  %v111_v15 = vld [vmem:[#allocation5 + $0x158] sm:$0xff]  ;;  %v110_v18 = vld [vmem:[#allocation5 + $0x150] sm:$0xff] }
  0x1b   :  { %395 = vmatpush3.msra.mxu1 %v114_v7  ;;  %333 = vmatpush3.msra.mxu0 %v81_v8  ;;  %v93_v19 = vld [vmem:[#allocation5 + $0xc8] sm:$0xff]  ;;  %v92_v22 = vld [vmem:[#allocation5 + $0xc0] sm:$0xff]  ;;  %v91_v25 = vld [vmem:[#allocation5 + $0xb8] sm:$0xff] }
  0x1c   :  { %396 = vmatprep.subr.mxu1 %v113_v9  ;;  %334 = vmatprep.subr.mxu0 %v96_v10  ;;  %v77_v20 = vld [vmem:[#allocation5 + $0x48] sm:$0xff]  ;;  %v76_v23 = vld [vmem:[#allocation5 + $0x40] sm:$0xff]  ;;  %v75_v26 = vld [vmem:[#allocation5 + $0x38] sm:$0xff] }
  0x1d   :  { %397 = vmatpush3.msra.mxu1 %v113_v9  ;;  %335 = vmatpush3.msra.mxu0 %v80_v11  ;;  %v109_v21 = vld [vmem:[#allocation5 + $0x148] sm:$0xff]  ;;  %v108_v24 = vld [vmem:[#allocation5 + $0x140] sm:$0xff]  ;;  %v107_v27 = vld [vmem:[#allocation5 + $0x138] sm:$0xff] }
  0x1e   :  { %398 = vmatprep.subr.mxu1 %v112_v12  ;;  %336 = vmatprep.subr.mxu0 %v95_v13  ;;  %v90_v28 = vld [vmem:[#allocation5 + $0xb0] sm:$0xff]  ;;  %v89_v31 = vld [vmem:[#allocation5 + $0xa8] sm:$0xff]  ;;  %v88_v34 = vld [vmem:[#allocation5 + $0xa0] sm:$0xff] }
  0x1f   :  { %399 = vmatpush3.msra.mxu1 %v112_v12  ;;  %337 = vmatpush3.msra.mxu0 %v79_v14  ;;  %v74_v29 = vld [vmem:[#allocation5 + $0x30] sm:$0xff]  ;;  %v73_v32 = vld [vmem:[#allocation5 + $0x28] sm:$0xff]  ;;  %v72_v35 = vld [vmem:[#allocation5 + $0x20] sm:$0xff] }
  0x20   :  { %400 = vmatprep.subr.mxu1 %v111_v15  ;;  %338 = vmatprep.subr.mxu0 %v94_v16  ;;  %v106_v30 = vld [vmem:[#allocation5 + $0x130] sm:$0xff]  ;;  %v105_v33 = vld [vmem:[#allocation5 + $0x128] sm:$0xff]  ;;  %v104_v36 = vld [vmem:[#allocation5 + $0x120] sm:$0xff] }
  0x21   :  { %401 = vmatpush3.msra.mxu1 %v111_v15  ;;  %339 = vmatpush3.msra.mxu0 %v78_v17  ;;  %v87_v37 = vld [vmem:[#allocation5 + $0x98] sm:$0xff]  ;;  %v86_v40 = vld [vmem:[#allocation5 + $0x90] sm:$0xff]  ;;  %v85_v43 = vld [vmem:[#allocation5 + $0x88] sm:$0xff] }
  0x22   :  { %402 = vmatprep.subr.mxu1 %v110_v18  ;;  %340 = vmatprep.subr.mxu0 %v93_v19  ;;  %v71_v38 = vld [vmem:[#allocation5 + $0x18] sm:$0xff]  ;;  %v70_v41 = vld [vmem:[#allocation5 + $0x10] sm:$0xff]  ;;  %v69_v44 = vld [vmem:[#allocation5 + $0x8] sm:$0xff] }
  0x23   :  { %403 = vmatpush3.msra.mxu1 %v110_v18  ;;  %341 = vmatpush3.msra.mxu0 %v77_v20  ;;  %v103_v39 = vld [vmem:[#allocation5 + $0x118] sm:$0xff]  ;;  %v102_v42 = vld [vmem:[#allocation5 + $0x110] sm:$0xff]  ;;  %v101_v45 = vld [vmem:[#allocation5 + $0x108] sm:$0xff] }
  0x24   :  { %404 = vmatprep.subr.mxu1 %v109_v21  ;;  %342 = vmatprep.subr.mxu0 %v92_v22  ;;  %v84_v46 = vld [vmem:[#allocation5 + $0x80] sm:$0xff]  ;;  %v57_v47 = vld [vmem:[%s562_s1 + $0x8] sm:$0xff]  ;;  %v58_v51 = vld [vmem:[%s562_s1 + $0x10] sm:$0xff] }
  0x25   :  { %405 = vmatpush3.msra.mxu1 %v109_v21  ;;  %343 = vmatpush3.msra.mxu0 %v76_v23  ;;  %v68_v48 = vld [vmem:[#allocation5] sm:$0xff]  ;;  %v61_v52 = vld [vmem:[%s562_s1 + $0x28] sm:$0xff]  ;;  %v59_v55 = vld [vmem:[%s562_s1 + $0x18] sm:$0xff] }
  0x26   :  { %406 = vmatprep.subr.mxu1 %v108_v24  ;;  %344 = vmatprep.subr.mxu0 %v91_v25  ;;  %v56_v49 = vld [vmem:[%s562_s1] sm:$0xff]  ;;  %v63_v56 = vld [vmem:[%s562_s1 + $0x38] sm:$0xff]  ;;  %v62_v58 = vld [vmem:[%s562_s1 + $0x30] sm:$0xff] }
  0x27   :  { %407 = vmatpush3.msra.mxu1 %v108_v24  ;;  %345 = vmatpush3.msra.mxu0 %v75_v26  ;;  %v100_v50 = vld [vmem:[#allocation5 + $0x100] sm:$0xff]  ;;  %v67_v57 = vld [vmem:[%s562_s1 + $0x58] sm:$0xff]  ;;  %v66_v59 = vld [vmem:[%s562_s1 + $0x50] sm:$0xff] }
  0x28   :  { %408 = vmatprep.subr.mxu1 %v107_v27  ;;  %346 = vmatprep.subr.mxu0 %v90_v28  ;;  %v60_v53 = vld [vmem:[%s562_s1 + $0x20] sm:$0xff]  ;;  %v65_v60 = vld [vmem:[%s562_s1 + $0x48] sm:$0xff]  ;;  %v52_v2 = vld [vmem:[#allocation2 + $0x10] sm:$0xff] }
  0x29   :  { %409 = vmatpush3.msra.mxu1 %v107_v27  ;;  %347 = vmatpush3.msra.mxu0 %v74_v29  ;;  %v64_v54 = vld [vmem:[%s562_s1 + $0x40] sm:$0xff]  ;;  %v54_v17 = vld [vmem:[#allocation2 + $0x18] sm:$0xff]  ;;  %v55_v22 = vld [vmem:[#allocation2 + $0x8] sm:$0xff] }
  0x2a   :  { %410 = vmatprep.subr.mxu1 %v106_v30  ;;  %348 = vmatprep.subr.mxu0 %v89_v31  ;;  %v53_v9 = vld [vmem:[#allocation2] sm:$0xff] }
  0x2b   :  { %411 = vmatpush3.msra.mxu1 %v106_v30  ;;  %349 = vmatpush3.msra.mxu0 %v73_v32 }
  0x2c   :  { %412 = vmatprep.subr.mxu1 %v105_v33  ;;  %350 = vmatprep.subr.mxu0 %v88_v34 }
  0x2d   :  { %413 = vmatpush3.msra.mxu1 %v105_v33  ;;  %351 = vmatpush3.msra.mxu0 %v72_v35 }
  0x2e   :  { %414 = vmatprep.subr.mxu1 %v104_v36  ;;  %352 = vmatprep.subr.mxu0 %v87_v37 }
  0x2f   :  { %415 = vmatpush3.msra.mxu1 %v104_v36  ;;  %353 = vmatpush3.msra.mxu0 %v71_v38 }
  0x30   :  { %416 = vmatprep.subr.mxu1 %v103_v39  ;;  %354 = vmatprep.subr.mxu0 %v86_v40 }
  0x31   :  { %417 = vmatpush3.msra.mxu1 %v103_v39  ;;  %355 = vmatpush3.msra.mxu0 %v70_v41 }
  0x32   :  { %418 = vmatprep.subr.mxu1 %v102_v42  ;;  %356 = vmatprep.subr.mxu0 %v85_v43 }
  0x33   :  { %419 = vmatpush3.msra.mxu1 %v102_v42  ;;  %357 = vmatpush3.msra.mxu0 %v69_v44 }
  0x34   :  { %420 = vmatprep.subr.mxu1 %v101_v45  ;;  %358 = vmatprep.subr.mxu0 %v84_v46 }
  0x35   :  { %180 = vmatprep.mubr.f32.mxu0 %v57_v47  ;;  %359 = vmatpush3.msra.mxu0 %v68_v48 }
  0x36   :  { %421 = vmatpush3.msra.mxu1 %v101_v45  ;;  %181 = vmatmul.mubr.f32.vlgmr.msra.gmra.mxu0 %v56_v49 }
  0x37   :  { %422 = vmatprep.subr.mxu1 %v100_v50  ;;  %424 = vmatprep.mubr.f32.mxu1 %v58_v51 }
  0x38   :  { %423 = vmatpush3.msra.mxu1 %v100_v50  ;;  %185 = vmatprep.mubr.f32.mxu0 %v60_v53 }
  0x39   :  { %425 = vmatmul.mubr.f32.vlgmr.msra.gmra.mxu1 %v61_v52 }
  0x3a   :  { %427 = vmatprep.mubr.f32.mxu1 %v64_v54  ;;  %186 = vmatmul.mubr.f32.gmra.mxu0 %v59_v55 }
  0x3b   :  { %190 = vmatprep.mubr.f32.mxu0 %v63_v56 }
  0x3d   :  { %428 = vmatmul.mubr.f32.gmra.mxu1 %v67_v57 }
  0x3e   :  { %191 = vmatmul.mubr.f32.gmra.mxu0 %v62_v58 }
  0x3f   :  { %195 = vmatprep.mubr.f32.mxu0 %v66_v59 }
  0x42   :  { %196 = vmatmul.mubr.f32.gmra.mxu0 %v65_v60 }
  0xf6   :  { %v360_v61 = vpop.f32.mrf.mxu0 }
  0xf8   :  { %v361_v62 = vpop.f32.mrf.mxu0 }
  0xf9   :  { %v426_v63 = vpop.f32.mrf.mxu1  ;;  %v362_v0 = vadd.f32 %v361_v62, %v360_v61 }
  0xfa   :  { %v363_v1 = vpop.f32.mrf.mxu0 }
  0xfb   :  { %v267_v3 = vpop.f32.mrf.mxu1 }
  0xfc   :  { %v268_v4 = vadd.f32 %v362_v0, %v267_v3  ;;  %v364_v5 = vpop.f32.mrf.mxu0 }
  0xfd   :  { %v429_v6 = vpop.f32.mrf.mxu1  ;;  %v365_v8 = vadd.f32 %v364_v5, %v363_v1 }
  0xfe   :  { %v286_v7 = vadd.f32 %v268_v4, %v52_v2  ;;  %v366_v10 = vpop.f32.mrf.mxu0 }
  0xff   :  { %v273_v11 = vadd.f32 %v426_v63, %v365_v8  ;;  %v277_v13 = vpop.f32.mrf.mxu1 }
 0x100   :  { %290 = vst [vmem:[#allocation2 + $0x10] sm:$0xff] %v286_v7  ;;  %v367_v12 = vpop.f32.mrf.mxu0 }
 0x101   :  { %v287_v14 = vadd.f32 %v273_v11, %v53_v9  ;;  %v368_v15 = vadd.f32 %v367_v12, %v366_v10 }
 0x102   :  { %v369_v16 = vpop.f32.mrf.mxu0 }
 0x103   :  { %291 = vst [vmem:[#allocation2] sm:$0xff] %v287_v14  ;;  %v278_v18 = vadd.f32 %v368_v15, %v277_v13 }
 0x104   :  { %v370_v19 = vpop.f32.mrf.mxu0 }
 0x105   :  { %v288_v20 = vadd.f32 %v278_v18, %v54_v17  ;;  %v371_v21 = vadd.f32 %v370_v19, %v369_v16 }
 0x107   :  { %292 = vst [vmem:[#allocation2 + $0x18] sm:$0xff] %v288_v20  ;;  %v283_v23 = vadd.f32 %v429_v6, %v371_v21 }
 0x109   :  { %v289_v24 = vadd.f32 %v283_v23, %v55_v22 }
 0x10b   :  { %293 = vst [vmem:[#allocation2 + $0x8] sm:$0xff] %v289_v24 }
 0x10c PF:  { %s481_s1 = smov [#allocation8]  }
 0x10d   :  { %v297_v25 = vld [vmem:[#allocation2 + $0x10] sm:$0xff]  ;;  %v298_v26 = vld [vmem:[#allocation2] sm:$0xff]  ;;  %s314_s23 = sshll.u32 %s481_s1, 4  ;;  %s315_s23 = int_to_ptr.vmem [resolvable:$true] %s314_s23 }
 0x10e   :  { %v299_v27 = vld [vmem:[#allocation2 + $0x18] sm:$0xff]  ;;  %v301_v28 = vmax.f32 %v297_v25, 0.0  ;;  %v302_v29 = vmax.f32 %v298_v26, 0.0  ;;  %s454_s24 = scalar_lea.vmem %s315_s23, 512  ;;  %p459_p7 = scmp.lt.s32.totalorder %s315_s23, %s315_s23 }
 0x10f   :  { %v303_v30 = vmax.f32 %v299_v27, 0.0  ;;  %p455_p6 = scmp.ne.s32.totalorder %s315_s23, %s454_s24  ;;  %p460_p8 = scmp.lt.s32.totalorder %s454_s24, %s454_s24 }
 0x110   :  { %305 = vst [vmem:[#allocation8] sm:$0xff] %v301_v28  ;;  %306 = vst [vmem:[#allocation8 + $0x8] sm:$0xff] %v302_v29 }
 0x111   :  { %307 = vst [vmem:[#allocation8 + $0x10] sm:$0xff] %v303_v30  ;;  %p461_p9 = por %p460_p8, %p459_p7 }
 0x112   :  { %v300_v31 = vld [vmem:[#allocation2 + $0x8] sm:$0xff] }
 0x113   :  { %v304_v32 = vmax.f32 %v300_v31, 0.0  ;;  %p462_p10 = pnand %p461_p9, %p455_p6 }
 0x115   :  { %308 = vst [vmem:[#allocation8 + $0x18] sm:$0xff] %v304_v32 }
 0x116   :  { %465 = shalt.err (!%p462_p10)
}
 0x117   :  { %320 = dma.vmem_to_hbm [thread:$0]  %s315_s23, 512, %s565_s4, [#allocation7], %s479_s18, %s479_s18, %s480_s19  }
 0x118   :  { %476 = dma.done.wait [#allocation7], 512  }
 0x119   :  { %477 = vsyncadd [#allocation7], 4294966784 }
 0x11a   :  { %324 = vsyncpa [#allocation6], 1 }
 0x11b   :  { %325 = vsyncpa [#allocation7], 1 }

</bundles_post_ra>
